<compile_context>
chip_gen: v7x
topology: tpu7x:2x2x1
jax: 0.10.0
libtpu: 0.0.40
codegen_flags: <defaults>
</compile_context>

<pallas_src>
import functools
import math

import numpy as np
import jax
import jax.numpy as jnp
from jax.experimental import pallas as pl
from jax.experimental.pallas import tpu as pltpu


def _upsample_matrix(in_size, out_size):
    """Dense (out, in) bilinear interpolation matrix, align_corners=False (PyTorch)."""
    M = np.zeros((out_size, in_size), np.float32)
    scale = in_size / out_size
    for i in range(out_size):
        src = max((i + 0.5) * scale - 0.5, 0.0)
        i0 = min(int(np.floor(src)), in_size - 1)
        p = 1 if i0 < in_size - 1 else 0
        l1 = src - i0
        M[i, i0] += 1.0 - l1
        M[i, i0 + p] += l1
    return M


def _pool_selectors_packed(H, W, Hp, Wp):
    """(H*W, 4*Hp*Wp) packed selection matrix: lanes [d*P:(d+1)*P] select offset d."""
    P = Hp * Wp
    S = np.zeros((H * W, 4 * P), np.float32)
    for dp in range(2):
        for dq in range(2):
            d = dp * 2 + dq
            for p in range(Hp):
                for q in range(Wp):
                    S[(2 * p + dp) * W + (2 * q + dq), d * P + p * Wp + q] = 1.0
    return S


def _row_blocking(N, C, P):
    """Choose nb (images per grid step) and G (grid steps).

    R = nb*C is a multiple of 8, capped at min(128, ~2*P) so the block-diagonal conv
    matmul stays below the pool/upsample flops; the batch is padded up to G*nb.
    """
    nb0 = 8 // math.gcd(C, 8)                      # smallest nb with (nb*C) % 8 == 0
    cap = min(128, max(8, (2 * P) // 8 * 8))       # row cap per grid step
    cap = max(cap, nb0 * C)                        # never below one aligned image group
    nb_max = max(1, (cap // C) // nb0) * nb0
    if N <= nb_max:
        nb = -(-N // nb0) * nb0                    # single step, minimal padding
    else:
        nb = nb_max
    G = -(-N // nb)
    return nb, G


def _res_unit_kernel(Wp, P, x_ref, spool_ref, ut_ref, w_ref, b_ref, m_ref, o_ref):
    x_f32 = x_ref[...].astype(jnp.float32)                  # (R, H*W) lane-dense slab
    x_bf = x_f32.astype(jnp.bfloat16)

    # ---- 2x2 max pool, stride 2: one packed bf16 selection matmul (MXU) with a
    #      lane-dense (R, 4P) output, then max-reduce the 4 offsets (XLU rolls + VPU). ----
    cand = jnp.dot(x_bf, spool_ref[...], preferred_element_type=jnp.float32)   # (R, 4P)
    m1 = jnp.maximum(cand, pltpu.roll(cand, 2 * P, axis=1))
    m2 = jnp.maximum(m1, pltpu.roll(m1, P, axis=1))
    pooled = m2[:, :P]                                       # (R, P) f32

    # ---- 3x3 conv (padding=1): tap shifts = XLU roll + precomputed edge mask,
    #      then ONE fused MXU matmul with K = 9R against [W0|...|W8]. ----
    shifted = []
    for t in range(9):
        dh, dw = t // 3 - 1, t % 3 - 1
        off = dh * Wp + dw
        if off == 0:
            shifted.append(pooled)
        else:
            s = pltpu.roll(pooled, (-off) % P, axis=1)       # s[:, p] = pooled[:, p + off]
            shifted.append(s * m_ref[pl.ds(t, 1), :])        # zero out-of-image taps
    patches = jnp.concatenate(shifted, axis=0).astype(jnp.bfloat16)            # (9R, P)
    conv = jnp.dot(w_ref[...], patches,
                   preferred_element_type=jnp.float32) + b_ref[...]            # (R, P)

    # ---- bilinear x2 upsample (single matmul), sigmoid (EUP), residual multiply ----
    up = jnp.dot(conv.astype(jnp.bfloat16), ut_ref[...],
                 preferred_element_type=jnp.float32)                           # (R, H*W)
    sig = pl.reciprocal(1.0 + jnp.exp(-up), approx=True)
    o_ref[...] = (x_f32 * sig).astype(o_ref.dtype)


def res_unit_forward(x, weight, bias):
    N, C, H, W = x.shape
    assert H % 2 == 0 and W % 2 == 0, "res_unit kernel requires even spatial dims"
    Hp, Wp = H // 2, W // 2
    HW, P = H * W, Hp * Wp

    nb, G = _row_blocking(N, C, P)
    R = nb * C
    Npad = G * nb
    Rtot = Npad * C

    # ---- host-side constant operators (bf16 matmul operands, f32 bias/masks) ----
    spool = jnp.asarray(_pool_selectors_packed(H, W, Hp, Wp), dtype=jnp.bfloat16)  # (HW, 4P)
    mh = _upsample_matrix(Hp, H)                                                   # (H, Hp)
    mw = _upsample_matrix(Wp, W)                                                   # (W, Wp)
    ut = jnp.asarray(np.kron(mh, mw).T, dtype=jnp.bfloat16)                        # (P, HW)

    w_np = np.asarray(weight, np.float32)                                          # (C,C,3,3)
    eye_nb = np.eye(nb, dtype=np.float32)
    wbig = np.concatenate(
        [np.kron(eye_nb, w_np[:, :, t // 3, t % 3]) for t in range(9)], axis=1)    # (R, 9R)
    wbig = jnp.asarray(wbig, dtype=jnp.bfloat16)
    bcol = jnp.asarray(np.tile(np.asarray(bias, np.float32), nb).reshape(R, 1))    # (R, 1)

    hh = np.arange(P) // Wp
    ww = np.arange(P) % Wp
    tapmask = np.zeros((9, P), np.float32)
    for t in range(9):
        dh, dw = t // 3 - 1, t % 3 - 1
        ok = (hh + dh >= 0) & (hh + dh < Hp) & (ww + dw >= 0) & (ww + dw < Wp)
        tapmask[t] = ok.astype(np.float32)
    tapmask = jnp.asarray(tapmask)                                                 # (9, P)

    # ---- lane-dense input slab, batch padded to G*nb images ----
    if Npad != N:
        x_in = jnp.concatenate(
            [x, jnp.zeros((Npad - N, C, H, W), x.dtype)], axis=0)
    else:
        x_in = x
    x2 = x_in.reshape(Rtot, HW)

    flops_per_step = (2 * R * HW * 4 * P        # packed pool selection matmul
                      + 2 * R * (9 * R) * P     # fused conv matmul (K = 9R)
                      + 2 * R * P * HW          # upsample matmul
                      + 10 * R * HW)            # elementwise
    cost = pl.CostEstimate(
        flops=int(G * flops_per_step),
        transcendentals=int(Rtot * HW),
        bytes_accessed=int(4 * 2 * Rtot * HW
                           + 2 * (spool.size + ut.size + wbig.size)
                           + 4 * (bcol.size + tapmask.size)))

    kernel = functools.partial(_res_unit_kernel, Wp, P)
    out2 = pl.pallas_call(
        kernel,
        out_shape=jax.ShapeDtypeStruct((Rtot, HW), x.dtype),
        grid=(G,),
        in_specs=[
            pl.BlockSpec((R, HW), lambda g: (g, 0)),          # x slab (nb images)
            pl.BlockSpec((HW, 4 * P), lambda g: (0, 0)),      # packed pool selectors (bf16)
            pl.BlockSpec((P, HW), lambda g: (0, 0)),          # upsample operator^T (bf16)
            pl.BlockSpec((R, 9 * R), lambda g: (0, 0)),       # fused conv weight (bf16)
            pl.BlockSpec((R, 1), lambda g: (0, 0)),           # bias per row
            pl.BlockSpec((9, P), lambda g: (0, 0)),           # per-tap edge masks
        ],
        out_specs=pl.BlockSpec((R, HW), lambda g: (g, 0)),
        compiler_params=pltpu.CompilerParams(
            dimension_semantics=("parallel",),
            vmem_limit_bytes=32 * 1024 * 1024),
        cost_estimate=cost,
    )(x2, spool, ut, wbig, bcol, tapmask)

    return out2.reshape(Npad, C, H, W)[:N]


def res_unit_reference(x, weight, bias):
    """Pure-JAX reference (same math as nn.MaxPool2d/Conv2d/Upsample(bilinear)/Sigmoid/mul)."""
    N, C, H, W = x.shape
    Hp, Wp = H // 2, W // 2
    pooled = jax.lax.reduce_window(x, -jnp.inf, jax.lax.max,
                                   (1, 1, 2, 2), (1, 1, 2, 2), 'VALID')
    conv = jax.lax.conv_general_dilated(
        pooled, weight, (1, 1), 'SAME',
        dimension_numbers=('NCHW', 'OIHW', 'NCHW'),
        precision=jax.lax.Precision.HIGHEST) + bias[None, :, None, None]
    mh = jnp.asarray(_upsample_matrix(Hp, H))
    mw = jnp.asarray(_upsample_matrix(Wp, W))
    up = jnp.einsum('hp,ncpq,wq->nchw', mh, conv, mw,
                    precision=jax.lax.Precision.HIGHEST)
    return x * jax.nn.sigmoid(up)


if __name__ == "__main__":
    key = jax.random.PRNGKey(0)
    kx, kw, kb = jax.random.split(key, 3)
    N, C, H, W = 2, 4, 16, 16

    x = jax.random.normal(kx, (N, C, H, W), dtype=jnp.float32)
    bound = 1.0 / np.sqrt(C * 3 * 3)                        # PyTorch Conv2d default init range
    weight = jax.random.uniform(kw, (C, C, 3, 3), jnp.float32, -bound, bound)
    bias = jax.random.uniform(kb, (C,), jnp.float32, -bound, bound)

    out = res_unit_forward(x, weight, bias)
    out = jax.block_until_ready(out)

    ref = res_unit_reference(x, weight, bias)
    assert out.shape == (N, C, H, W)
    np.testing.assert_allclose(np.asarray(out), np.asarray(ref), rtol=3e-2, atol=3e-2)
    print("KERNEL_OK")
</pallas_src>

<mosaic_0001>
module attributes {stable_mosaic.version = 11 : i64} {
  func.func @_res_unit_kernel(%arg0: i32, %arg1: memref<8x256xf32, #tpu.memory_space<vmem>>, %arg2: memref<256x256xbf16, #tpu.memory_space<vmem>>, %arg3: memref<64x256xbf16, #tpu.memory_space<vmem>>, %arg4: memref<8x72xbf16, #tpu.memory_space<vmem>>, %arg5: memref<8x1xf32, #tpu.memory_space<vmem>>, %arg6: memref<9x64xf32, #tpu.memory_space<vmem>>, %arg7: memref<8x256xf32, #tpu.memory_space<vmem>>) attributes {dimension_semantics = [#tpu.dimension_semantics<parallel>], iteration_bounds = array<i64: 1>, scalar_prefetch = 0 : i64, scratch_operands = 0 : i64, tpu.core_type = #tpu.core_type<tc>, window_params = [{transform_indices = @transform_0, window_bounds = array<i64: 8, 256>}, {pipeline_mode = #tpu.pipeline_mode<synchronous>, transform_indices = @transform_1, window_bounds = array<i64: 256, 256>}, {pipeline_mode = #tpu.pipeline_mode<synchronous>, transform_indices = @transform_2, window_bounds = array<i64: 64, 256>}, {pipeline_mode = #tpu.pipeline_mode<synchronous>, transform_indices = @transform_3, window_bounds = array<i64: 8, 72>}, {pipeline_mode = #tpu.pipeline_mode<synchronous>, transform_indices = @transform_4, window_bounds = array<i64: 8, 1>}, {pipeline_mode = #tpu.pipeline_mode<synchronous>, transform_indices = @transform_5, window_bounds = array<i64: 9, 64>}, {transform_indices = @transform_6, window_bounds = array<i64: 8, 256>}]} {
    %c0 = arith.constant 0 : index
    %c0_0 = arith.constant 0 : index
    %0 = vector.load %arg1[%c0, %c0_0] : memref<8x256xf32, #tpu.memory_space<vmem>>, vector<8x256xf32>
    %1 = arith.truncf %0 : vector<8x256xf32> to vector<8x256xbf16>
    %c0_1 = arith.constant 0 : index
    %c0_2 = arith.constant 0 : index
    %2 = vector.load %arg2[%c0_1, %c0_2] : memref<256x256xbf16, #tpu.memory_space<vmem>>, vector<256x256xbf16>
    %cst = arith.constant dense<0.000000e+00> : vector<8x256xf32>
    %3 = tpu.matmul %1, %2, %cst {dimension_numbers = #tpu.dot_dimension_numbers<[1], [0], [0], [1], [0, 0, 1, 1], [], []>} : vector<8x256xbf16>, vector<256x256xbf16>, vector<8x256xf32> -> vector<8x256xf32>
    %c128_i32 = arith.constant 128 : i32
    %4 = tpu.dynamic_rotate %3 by %c128_i32 dim 1 : vector<8x256xf32>, i32 -> vector<8x256xf32>
    %5 = arith.maximumf %3, %4 : vector<8x256xf32>
    %c64_i32 = arith.constant 64 : i32
    %6 = tpu.dynamic_rotate %5 by %c64_i32 dim 1 : vector<8x256xf32>, i32 -> vector<8x256xf32>
    %7 = arith.maximumf %5, %6 : vector<8x256xf32>
    %8 = vector.extract_strided_slice %7 {offsets = [0, 0], sizes = [8, 64], strides = [1, 1]} : vector<8x256xf32> to vector<8x64xf32>
    %c9_i32 = arith.constant 9 : i32
    %9 = tpu.dynamic_rotate %8 by %c9_i32 dim 1 : vector<8x64xf32>, i32 -> vector<8x64xf32>
    %c0_3 = arith.constant 0 : index
    %c0_4 = arith.constant 0 : index
    %10 = vector.load %arg6[%c0_3, %c0_4] : memref<9x64xf32, #tpu.memory_space<vmem>>, vector<1x64xf32>
    %11 = vector.broadcast %10 : vector<1x64xf32> to vector<8x64xf32>
    %12 = arith.mulf %9, %11 : vector<8x64xf32>
    %c8_i32 = arith.constant 8 : i32
    %13 = tpu.dynamic_rotate %8 by %c8_i32 dim 1 : vector<8x64xf32>, i32 -> vector<8x64xf32>
    %c1 = arith.constant 1 : index
    %c0_5 = arith.constant 0 : index
    %14 = vector.load %arg6[%c1, %c0_5] : memref<9x64xf32, #tpu.memory_space<vmem>>, vector<1x64xf32>
    %15 = vector.broadcast %14 : vector<1x64xf32> to vector<8x64xf32>
    %16 = arith.mulf %13, %15 : vector<8x64xf32>
    %c7_i32 = arith.constant 7 : i32
    %17 = tpu.dynamic_rotate %8 by %c7_i32 dim 1 : vector<8x64xf32>, i32 -> vector<8x64xf32>
    %c2 = arith.constant 2 : index
    %c0_6 = arith.constant 0 : index
    %18 = vector.load %arg6[%c2, %c0_6] : memref<9x64xf32, #tpu.memory_space<vmem>>, vector<1x64xf32>
    %19 = vector.broadcast %18 : vector<1x64xf32> to vector<8x64xf32>
    %20 = arith.mulf %17, %19 : vector<8x64xf32>
    %c1_i32 = arith.constant 1 : i32
    %21 = tpu.dynamic_rotate %8 by %c1_i32 dim 1 : vector<8x64xf32>, i32 -> vector<8x64xf32>
    %c3 = arith.constant 3 : index
    %c0_7 = arith.constant 0 : index
    %22 = vector.load %arg6[%c3, %c0_7] : memref<9x64xf32, #tpu.memory_space<vmem>>, vector<1x64xf32>
    %23 = vector.broadcast %22 : vector<1x64xf32> to vector<8x64xf32>
    %24 = arith.mulf %21, %23 : vector<8x64xf32>
    %c63_i32 = arith.constant 63 : i32
    %25 = tpu.dynamic_rotate %8 by %c63_i32 dim 1 : vector<8x64xf32>, i32 -> vector<8x64xf32>
    %c5 = arith.constant 5 : index
    %c0_8 = arith.constant 0 : index
    %26 = vector.load %arg6[%c5, %c0_8] : memref<9x64xf32, #tpu.memory_space<vmem>>, vector<1x64xf32>
    %27 = vector.broadcast %26 : vector<1x64xf32> to vector<8x64xf32>
    %28 = arith.mulf %25, %27 : vector<8x64xf32>
    %c57_i32 = arith.constant 57 : i32
    %29 = tpu.dynamic_rotate %8 by %c57_i32 dim 1 : vector<8x64xf32>, i32 -> vector<8x64xf32>
    %c6 = arith.constant 6 : index
    %c0_9 = arith.constant 0 : index
    %30 = vector.load %arg6[%c6, %c0_9] : memref<9x64xf32, #tpu.memory_space<vmem>>, vector<1x64xf32>
    %31 = vector.broadcast %30 : vector<1x64xf32> to vector<8x64xf32>
    %32 = arith.mulf %29, %31 : vector<8x64xf32>
    %c56_i32 = arith.constant 56 : i32
    %33 = tpu.dynamic_rotate %8 by %c56_i32 dim 1 : vector<8x64xf32>, i32 -> vector<8x64xf32>
    %c7 = arith.constant 7 : index
    %c0_10 = arith.constant 0 : index
    %34 = vector.load %arg6[%c7, %c0_10] : memref<9x64xf32, #tpu.memory_space<vmem>>, vector<1x64xf32>
    %35 = vector.broadcast %34 : vector<1x64xf32> to vector<8x64xf32>
    %36 = arith.mulf %33, %35 : vector<8x64xf32>
    %c55_i32 = arith.constant 55 : i32
    %37 = tpu.dynamic_rotate %8 by %c55_i32 dim 1 : vector<8x64xf32>, i32 -> vector<8x64xf32>
    %c8 = arith.constant 8 : index
    %c0_11 = arith.constant 0 : index
    %38 = vector.load %arg6[%c8, %c0_11] : memref<9x64xf32, #tpu.memory_space<vmem>>, vector<1x64xf32>
    %39 = vector.broadcast %38 : vector<1x64xf32> to vector<8x64xf32>
    %40 = arith.mulf %37, %39 : vector<8x64xf32>
    %41 = tpu.concatenate %12, %16, %20, %24, %8, %28, %32, %36, %40 in 0 : vector<8x64xf32>, vector<8x64xf32>, vector<8x64xf32>, vector<8x64xf32>, vector<8x64xf32>, vector<8x64xf32>, vector<8x64xf32>, vector<8x64xf32>, vector<8x64xf32> -> vector<72x64xf32>
    %42 = arith.truncf %41 : vector<72x64xf32> to vector<72x64xbf16>
    %c0_12 = arith.constant 0 : index
    %c0_13 = arith.constant 0 : index
    %43 = vector.load %arg4[%c0_12, %c0_13] : memref<8x72xbf16, #tpu.memory_space<vmem>>, vector<8x72xbf16>
    %cst_14 = arith.constant dense<0.000000e+00> : vector<8x64xf32>
    %44 = tpu.matmul %43, %42, %cst_14 {dimension_numbers = #tpu.dot_dimension_numbers<[1], [0], [0], [1], [0, 0, 1, 1], [], []>} : vector<8x72xbf16>, vector<72x64xbf16>, vector<8x64xf32> -> vector<8x64xf32>
    %c0_15 = arith.constant 0 : index
    %c0_16 = arith.constant 0 : index
    %45 = vector.load %arg5[%c0_15, %c0_16] : memref<8x1xf32, #tpu.memory_space<vmem>>, vector<8x1xf32>
    %46 = vector.broadcast %45 : vector<8x1xf32> to vector<8x64xf32>
    %47 = arith.addf %44, %46 : vector<8x64xf32>
    %48 = arith.truncf %47 : vector<8x64xf32> to vector<8x64xbf16>
    %c0_17 = arith.constant 0 : index
    %c0_18 = arith.constant 0 : index
    %49 = vector.load %arg3[%c0_17, %c0_18] : memref<64x256xbf16, #tpu.memory_space<vmem>>, vector<64x256xbf16>
    %cst_19 = arith.constant dense<0.000000e+00> : vector<8x256xf32>
    %50 = tpu.matmul %48, %49, %cst_19 {dimension_numbers = #tpu.dot_dimension_numbers<[1], [0], [0], [1], [0, 0, 1, 1], [], []>} : vector<8x64xbf16>, vector<64x256xbf16>, vector<8x256xf32> -> vector<8x256xf32>
    %cst_20 = arith.constant 0.000000e+00 : f32
    %51 = vector.broadcast %cst_20 : f32 to vector<8x256xf32>
    %52 = arith.subf %51, %50 : vector<8x256xf32>
    %53 = math.exp %52 : vector<8x256xf32>
    %cst_21 = arith.constant 1.000000e+00 : f32
    %54 = vector.broadcast %cst_21 : f32 to vector<8x256xf32>
    %55 = arith.addf %54, %53 : vector<8x256xf32>
    %56 = tpu.reciprocal %55 {approx = true} : vector<8x256xf32> -> vector<8x256xf32>
    %57 = arith.mulf %0, %56 : vector<8x256xf32>
    %c0_22 = arith.constant 0 : index
    %c0_23 = arith.constant 0 : index
    %58 = vector.load %arg7[%c0_22, %c0_23] : memref<8x256xf32, #tpu.memory_space<vmem>>, vector<8x256xf32>
    tpu.vector_store %arg7[%c0_22, %c0_23], %57 {strides = array<i32>} : memref<8x256xf32, #tpu.memory_space<vmem>>, vector<8x256xf32>,
    return
  }
  func.func @transform_0(%arg0: i32) -> (i32, i32) {
    %c0_i32 = arith.constant 0 : i32
    %c0_i32_0 = arith.constant 0 : i32
    return %arg0, %c0_i32 : i32, i32
  }
  func.func @transform_1(%arg0: i32) -> (i32, i32) {
    %c0_i32 = arith.constant 0 : i32
    %c0_i32_0 = arith.constant 0 : i32
    %c0_i32_1 = arith.constant 0 : i32
    return %c0_i32, %c0_i32_0 : i32, i32
  }
  func.func @transform_2(%arg0: i32) -> (i32, i32) {
    %c0_i32 = arith.constant 0 : i32
    %c0_i32_0 = arith.constant 0 : i32
    %c0_i32_1 = arith.constant 0 : i32
    return %c0_i32, %c0_i32_0 : i32, i32
  }
  func.func @transform_3(%arg0: i32) -> (i32, i32) {
    %c0_i32 = arith.constant 0 : i32
    %c0_i32_0 = arith.constant 0 : i32
    %c0_i32_1 = arith.constant 0 : i32
    return %c0_i32, %c0_i32_0 : i32, i32
  }
  func.func @transform_4(%arg0: i32) -> (i32, i32) {
    %c0_i32 = arith.constant 0 : i32
    %c0_i32_0 = arith.constant 0 : i32
    %c0_i32_1 = arith.constant 0 : i32
    return %c0_i32, %c0_i32_0 : i32, i32
  }
  func.func @transform_5(%arg0: i32) -> (i32, i32) {
    %c0_i32 = arith.constant 0 : i32
    %c0_i32_0 = arith.constant 0 : i32
    %c0_i32_1 = arith.constant 0 : i32
    return %c0_i32, %c0_i32_0 : i32, i32
  }
  func.func @transform_6(%arg0: i32) -> (i32, i32) {
    %c0_i32 = arith.constant 0 : i32
    %c0_i32_0 = arith.constant 0 : i32
    return %arg0, %c0_i32 : i32, i32
  }
}

</mosaic_0001>

<bundles_post_ra>
// kernel: tpu_custom_call.1
= control target key start
LH: loop header
LB: loop body
LE: loop exit
PB: predicated region body
PF: predicated region fallthrough
CT: control target
= control target key end

     0   :  { %11 = vsyncpa [#allocation3], 0  ;;  %s1044_s0 = inlined_call_operand.hbm [shape: f32[8,256], index: 0, kind: input, shape index: {}]   ;;  %s1045_s1 = inlined_call_operand.hbm [shape: bf16[256,256], index: 1, kind: input, shape index: {}]   ;;  %s1046_s2 = inlined_call_operand.hbm [shape: bf16[64,256], index: 2, kind: input, shape index: {}]   ;;  %s1047_s3 = inlined_call_operand.vmem [shape: bf16[8,72], index: 3, kind: input, shape index: {}]   ;;  %s1048_s4 = inlined_call_operand.vmem [shape: f32[8,1], index: 4, kind: input, shape index: {}]   ;;  %s1049_s5 = inlined_call_operand.vmem [shape: f32[9,64], index: 5, kind: input, shape index: {}]   ;;  %s1050_s6 = inlined_call_operand.hbm [shape: f32[8,256], index: 6, kind: output, shape index: {}]  }
   0x1   :  { %12 = vsyncpa [#allocation6], 0 }
   0x2   :  { %13 = vsyncpa [#allocation4], 0  ;;  %s887_s21 = smov [#allocation5]   ;;  %s793_s25 = scalar_lea.hbm %s1045_s1, 4096 }
   0x3   :  { %s29_s22 = sshll.u32 %s887_s21, 4  ;;  %p794_p0 = scmp.ne.s32.totalorder %s1045_s1, %s793_s25  ;;  %s30_s22 = int_to_ptr.vmem [resolvable:$true] %s29_s22 }
   0x4   :  { %p797_p1 = scmp.lt.u32.totalorder %s793_s25, %s1045_s1 }
   0x6   :  { %p799_p2 = pnand %p797_p1, %p794_p0 }
   0x8   :  { %802 = shalt.err (!%p799_p2)
}
   0x9   :  { %s803_s30 = scalar_lea.vmem %s30_s22, 4096  ;;  %p808_p4 = scmp.lt.s32.totalorder %s30_s22, %s30_s22 }
   0xa   :  { %p804_p3 = scmp.ne.s32.totalorder %s30_s22, %s803_s30  ;;  %p809_p5 = scmp.lt.s32.totalorder %s803_s30, %s803_s30 }
   0xc   :  { %p810_p6 = por %p809_p5, %p808_p4 }
   0xe   :  { %p811_p7 = pnand %p810_p6, %p804_p3 }
  0x10   :  { %814 = shalt.err (!%p811_p7)
}
  0x11   :  { %s888_s7 = smov 128   ;;  %s889_s8 = smov 8  }
  0x12   :  { %35 = dma.hbm_to_vmem [thread:$0]  %s1045_s1, 4096, %s30_s22, [#allocation6], %s888_s7, %s888_s7, %s889_s8  }
  0x13   :  { %s890_s11 = smov [#allocation2]   ;;  %s891_s13 = smov [#allocation7]  }
  0x14   :  { %s20_s12 = sshll.u32 %s890_s11, 4  ;;  %s41_s14 = sshll.u32 %s891_s13, 4  ;;  %s21_s12 = int_to_ptr.vmem [resolvable:$true] %s20_s12  ;;  %s42_s14 = int_to_ptr.vmem [resolvable:$true] %s41_s14 }
  0x15   :  { %s815_s17 = scalar_lea.hbm %s1044_s0, 256 }
  0x16   :  { %p816_p8 = scmp.ne.s32.totalorder %s1044_s0, %s815_s17  ;;  %p819_p9 = scmp.lt.u32.totalorder %s815_s17, %s1044_s0 }
  0x18   :  { %p821_p10 = pnand %p819_p9, %p816_p8 }
  0x1a   :  { %824 = shalt.err (!%p821_p10)
}
  0x1b   :  { %s825_s1 = scalar_lea.vmem %s21_s12, 256  ;;  %p830_p12 = scmp.lt.s32.totalorder %s21_s12, %s21_s12 }
  0x1c   :  { %p826_p11 = scmp.ne.s32.totalorder %s21_s12, %s825_s1  ;;  %p831_p13 = scmp.lt.s32.totalorder %s825_s1, %s825_s1 }
  0x1e   :  { %p832_p0 = por %p831_p13, %p830_p12 }
  0x20   :  { %p833_p1 = pnand %p832_p0, %p826_p11 }
  0x22   :  { %836 = shalt.err (!%p833_p1)
}
  0x23   :  { %23 = dma.hbm_to_vmem [thread:$0]  %s1044_s0, 256, %s21_s12, [#allocation3]  }
  0x24   :  { %s837_s26 = scalar_lea.hbm %s1046_s2, 1024 }
  0x25   :  { %p838_p2 = scmp.ne.s32.totalorder %s1046_s2, %s837_s26  ;;  %p841_p3 = scmp.lt.u32.totalorder %s837_s26, %s1046_s2 }
  0x27   :  { %p843_p4 = pnand %p841_p3, %p838_p2 }
  0x29   :  { %846 = shalt.err (!%p843_p4)
}
  0x2a   :  { %s847_s9 = scalar_lea.vmem %s42_s14, 1024  ;;  %p852_p6 = scmp.lt.s32.totalorder %s42_s14, %s42_s14 }
  0x2b   :  { %p848_p5 = scmp.ne.s32.totalorder %s42_s14, %s847_s9  ;;  %p853_p7 = scmp.lt.s32.totalorder %s847_s9, %s847_s9 }
  0x2d   :  { %p854_p8 = por %p853_p7, %p852_p6 }
  0x2f   :  { %p855_p9 = pnand %p854_p8, %p848_p5 }
  0x31   :  { %858 = shalt.err (!%p855_p9)
}
  0x32   :  { %47 = dma.hbm_to_vmem [thread:$0]  %s1046_s2, 1024, %s42_s14, [#allocation6], %s888_s7, %s888_s7, %s889_s8  }
  0x33   :  { %881 = dma.done.wait [#allocation3], 256  }
  0x34   :  { %882 = vsyncadd [#allocation3], 4294967040 }
  0x35   :  { %883 = dma.done.wait [#allocation6], 5120  }
  0x36   :  { %884 = vsyncadd [#allocation6], 4294962176  ;;  %v725_v0 = vld [vmem:[#allocation5 + $0x4] ss:$8 sps:$4 sm:$0xff]   ;;  %v727_v1 = vld [vmem:[#allocation5] ss:$8 sps:$4 sm:$0xff]  }
  0x37   :  { %260 = vmatprep.subr.bf16.mxu0 %v725_v0  ;;  %v728_v2 = vld [vmem:[#allocation5 + $0x14] ss:$8 sps:$4 sm:$0xff]   ;;  %v730_v3 = vld [vmem:[#allocation5 + $0x10] ss:$8 sps:$4 sm:$0xff]   ;;  %v731_v4 = vld [vmem:[#allocation5 + $0x24] ss:$8 sps:$4 sm:$0xff]  }
  0x38   :  { %261 = vmatpush1.bf16.msra.mxu0 %v727_v1  ;;  %v733_v5 = vld [vmem:[#allocation5 + $0x20] ss:$8 sps:$4 sm:$0xff]   ;;  %v734_v6 = vld [vmem:[#allocation5 + $0x34] ss:$8 sps:$4 sm:$0xff]   ;;  %v736_v7 = vld [vmem:[#allocation5 + $0x30] ss:$8 sps:$4 sm:$0xff]  }
  0x39   :  { %262 = vmatprep.subr.bf16.mxu0 %v728_v2  ;;  %v737_v8 = vld [vmem:[#allocation5 + $0x44] ss:$8 sps:$4 sm:$0xff]   ;;  %v739_v9 = vld [vmem:[#allocation5 + $0x40] ss:$8 sps:$4 sm:$0xff]   ;;  %v740_v10 = vld [vmem:[#allocation5 + $0x54] ss:$8 sps:$4 sm:$0xff]  }
  0x3a   :  { %v742_v11 = vld [vmem:[#allocation5 + $0x50] ss:$8 sps:$4 sm:$0xff]   ;;  %v743_v12 = vld [vmem:[#allocation5 + $0x64] ss:$8 sps:$4 sm:$0xff]   ;;  %v745_v13 = vld [vmem:[#allocation5 + $0x60] ss:$8 sps:$4 sm:$0xff]  }
  0x3b   :  { %v989_v14 = vld [vmem:[#allocation2 + $0x8] sm:$0xff]  ;;  %v749_v18 = vld [vmem:[#allocation5 + $0x84] ss:$8 sps:$4 sm:$0xff]   ;;  %v751_v19 = vld [vmem:[#allocation5 + $0x80] ss:$8 sps:$4 sm:$0xff]   ;;  %s892_s2 = smov 64  }
  0x3c   :  { %263 = vmatpush1.bf16.msra.mxu0 %v730_v3  ;;  %v67_v15 = vpack.c.bf16 %v989_v14, %v989_v14  ;;  %v746_v16 = vld [vmem:[#allocation5 + $0x74] ss:$8 sps:$4 sm:$0xff]   ;;  %v748_v17 = vld [vmem:[#allocation5 + $0x70] ss:$8 sps:$4 sm:$0xff]   ;;  %v755_v22 = vld [vmem:[#allocation5 + $0xa4] ss:$8 sps:$4 sm:$0xff]  }
  0x3d   :  { %264 = vmatprep.subr.bf16.mxu0 %v731_v4  ;;  %v752_v20 = vld [vmem:[#allocation5 + $0x94] ss:$8 sps:$4 sm:$0xff]   ;;  %v754_v21 = vld [vmem:[#allocation5 + $0x90] ss:$8 sps:$4 sm:$0xff]   ;;  %v757_v23 = vld [vmem:[#allocation5 + $0xa0] ss:$8 sps:$4 sm:$0xff]  }
  0x3e   :  { %292 = vmatprep.mubr.bf16.mxu0 %v67_v15  ;;  %v758_v24 = vld [vmem:[#allocation5 + $0xb4] ss:$8 sps:$4 sm:$0xff]   ;;  %v760_v25 = vld [vmem:[#allocation5 + $0xb0] ss:$8 sps:$4 sm:$0xff]   ;;  %v761_v26 = vld [vmem:[#allocation5 + $0xc4] ss:$8 sps:$4 sm:$0xff]  }
  0x3f   :  { %v763_v27 = vld [vmem:[#allocation5 + $0xc0] ss:$8 sps:$4 sm:$0xff]   ;;  %v764_v28 = vld [vmem:[#allocation5 + $0xd4] ss:$8 sps:$4 sm:$0xff]   ;;  %v766_v29 = vld [vmem:[#allocation5 + $0xd0] ss:$8 sps:$4 sm:$0xff]  }
  0x40   :  { %265 = vmatpush1.bf16.msra.mxu0 %v733_v5  ;;  %v767_v30 = vld [vmem:[#allocation5 + $0xe4] ss:$8 sps:$4 sm:$0xff]   ;;  %v769_v31 = vld [vmem:[#allocation5 + $0xe0] ss:$8 sps:$4 sm:$0xff]   ;;  %v770_v32 = vld [vmem:[#allocation5 + $0xf4] ss:$8 sps:$4 sm:$0xff]  }
  0x41   :  { %266 = vmatprep.subr.bf16.mxu0 %v734_v6  ;;  %v772_v33 = vld [vmem:[#allocation5 + $0xf0] ss:$8 sps:$4 sm:$0xff]   ;;  %s893_s12 = smov 57   ;;  %v665_v44 = vld [vmem:[%s1049_s5 + $0x5] ss:$0 sm:$0xff]  ;;  %s894_s15 = smov 1  }
  0x42   :  { %v993_v34 = vld [vmem:[#allocation2] sm:$0xff]  ;;  %s895_s20 = smov 55   ;;  %vm307_vm0 = vcmask 1048064   ;;  %s896_s22 = smov 56   ;;  %v668_v52 = vld [vmem:[%s1049_s5 + $0x8] ss:$0 sm:$0xff] }
  0x43   :  { %v66_v35 = vpack.c.bf16 %v993_v34, %v993_v34  ;;  %v663_v43 = vld [vmem:[%s1049_s5 + $0x2] ss:$0 sm:$0xff]  ;;  %v667_v45 = vld [vmem:[%s1049_s5 + $0x7] ss:$0 sm:$0xff]  ;;  %v661_v46 = vld [vmem:[%s1049_s5] ss:$0 sm:$0xff] }
  0x44   :  { %267 = vmatpush1.bf16.msra.mxu0 %v736_v7  ;;  %v662_v49 = vld [vmem:[%s1049_s5 + $0x1] ss:$0 sm:$0xff]  ;;  %v664_v50 = vld [vmem:[%s1049_s5 + $0x3] ss:$0 sm:$0xff]  ;;  %v666_v51 = vld [vmem:[%s1049_s5 + $0x6] ss:$0 sm:$0xff] }
  0x45   :  { %268 = vmatprep.subr.bf16.mxu0 %v737_v8  ;;  %s898_s27 = smov 7   ;;  %s899_s30 = smov 9   ;;  %v902_v61 = vmov 0.0   ;;  %vm909_vm1 = vmmov 0   ;;  %vm461_vm2 = vcmask 1043456   ;;  %vm457_vm3 = vcmask 588800  }
  0x46   :  { %s900_s9 = smov 126   ;;  %s901_s0 = smov 127   ;;  %685 = vmatprep.subr.bf16.mxu1 %v902_v61  ;;  %695 = vmatprep.mubr.msk.bf16.mxu1 %vm909_vm1, %v902_v61  ;;  %vm554_vm4 = vcmask 523264  }
  0x47   :  { %s903_s5 = smov 120   ;;  %s904_s10 = smov 48  }
  0x48   :  { %269 = vmatpush1.bf16.msra.mxu0 %v739_v9  ;;  %s906_s7 = smov 46   ;;  %s907_s11 = smov 47  }
  0x49   :  { %270 = vmatprep.subr.bf16.mxu0 %v740_v10 }
  0x4c   :  { %271 = vmatpush1.bf16.msra.mxu0 %v742_v11 }
  0x4d   :  { %272 = vmatprep.subr.bf16.mxu0 %v743_v12 }
  0x50   :  { %273 = vmatpush1.bf16.msra.mxu0 %v745_v13 }
  0x51   :  { %274 = vmatprep.subr.bf16.mxu0 %v746_v16 }
  0x54   :  { %275 = vmatpush1.bf16.msra.mxu0 %v748_v17 }
  0x55   :  { %276 = vmatprep.subr.bf16.mxu0 %v749_v18  ;;  %v910_v18 = vmov 0  }
  0x56   :  { %724 = vset.pattern.permute.xlu0 %v910_v18 }
  0x58   :  { %277 = vmatpush1.bf16.msra.mxu0 %v751_v19 }
  0x59   :  { %278 = vmatprep.subr.bf16.mxu0 %v752_v20 }
  0x5c   :  { %279 = vmatpush1.bf16.msra.mxu0 %v754_v21 }
  0x5d   :  { %280 = vmatprep.subr.bf16.mxu0 %v755_v22 }
  0x60   :  { %281 = vmatpush1.bf16.msra.mxu0 %v757_v23  ;;  %v432_v23 = vld [vmem:[%s1048_s4] sm:$0xff] }
  0x61   :  { %282 = vmatprep.subr.bf16.mxu0 %v758_v24 }
  0x64   :  { %283 = vmatpush1.bf16.msra.mxu0 %v760_v25 }
  0x65   :  { %284 = vmatprep.subr.bf16.mxu0 %v761_v26 }
  0x68   :  { %285 = vmatpush1.bf16.msra.mxu0 %v763_v27 }
  0x69   :  { %286 = vmatprep.subr.bf16.mxu0 %v764_v28 }
  0x6c   :  { %287 = vmatpush1.bf16.msra.mxu0 %v766_v29  ;;  %v775_v29 = vld [vmem:[#allocation7 + $0x4] ss:$8 sps:$4 sm:$0xff]  }
  0x6d   :  { %288 = vmatprep.subr.bf16.mxu0 %v767_v30 }
  0x70   :  { %289 = vmatpush1.bf16.msra.mxu0 %v769_v31  ;;  %v431_v31 = vld [vmem:[%s1047_s3] sm:$0xf]  ;;  %s911_s3 = smov [#allocation8]  }
  0x71   :  { %290 = vmatprep.subr.bf16.mxu0 %v770_v32  ;;  %v773_v32 = vld [vmem:[#allocation7] ss:$8 sps:$4 sm:$0xff]   ;;  %s619_s16 = sshll.u32 %s911_s3, 4  ;;  %s620_s16 = int_to_ptr.vmem [resolvable:$true] %s619_s16 }
  0x72   :  { %s859_s17 = scalar_lea.vmem %s620_s16, 256  ;;  %p864_p11 = scmp.lt.s32.totalorder %s620_s16, %s620_s16 }
  0x73   :  { %p860_p10 = scmp.ne.s32.totalorder %s620_s16, %s859_s17  ;;  %p865_p12 = scmp.lt.s32.totalorder %s859_s17, %s859_s17 }
  0x74   :  { %291 = vmatpush1.bf16.msra.mxu0 %v772_v33  ;;  %v778_v33 = vld [vmem:[#allocation7 + $0x14] ss:$8 sps:$4 sm:$0xff]  }
  0x75   :  { %p866_p13 = por %p865_p12, %p864_p11 }
  0x77   :  { %293 = vmatmul.mubr.bf16.vlgmr.msra.gmra.mrb[0].mxu0 %v66_v35  ;;  %v776_v35 = vld [vmem:[#allocation7 + $0x10] ss:$8 sps:$4 sm:$0xff]   ;;  %p867_p0 = pnand %p866_p13, %p860_p10 }
 0x14a   :  { %v294_v36 = vpop.f32.mrb[0].mxu0 }
 0x14b   :  { %v296_v37 = vpop.f32.mrb[1].mxu0 }
 0x14c   :  { %v301_v38 = vmax.f32 %v294_v36, %v296_v37  ;;  %v298_v39 = vpop.f32.mrb[2].mxu0  ;;  %v781_v36 = vld [vmem:[#allocation7 + $0x24] ss:$8 sps:$4 sm:$0xff]   ;;  %v779_v37 = vld [vmem:[#allocation7 + $0x20] ss:$8 sps:$4 sm:$0xff]  }
 0x14d   :  { %v299_v40 = vpop.f32.mrb[3].mxu0  ;;  %v782_v39 = vld [vmem:[#allocation7 + $0x30] ss:$8 sps:$4 sm:$0xff]  }
 0x14e   :  { %302 = vrot.lane.b32.xlu0 %v301_v38, %s892_s2 }
 0x1c0   :  { %v303_v41 = vpop.permute.xlu0 %302 }
 0x1c1   :  { %v306_v42 = vmax.f32 %v301_v38, %v303_v41  ;;  %v784_v38 = vld [vmem:[#allocation7 + $0x34] ss:$8 sps:$4 sm:$0xff]  }
 0x1c3   :  { %308 = vrot.lane.b32.xlu0 %v306_v42, %s892_s2 }
 0x1c7   :  { %340 = vrot.lane.b32.xlu0 %v663_v43, %s893_s12  ;;  %s908_s12 = smov 73  }
 0x1cb   :  { %360 = vrot.lane.b32.xlu0 %v665_v44, %s894_s15 }
 0x1cf   :  { %380 = vrot.lane.b32.xlu0 %v667_v45, %s889_s8  ;;  %s897_s8 = smov 63  }
 0x1d3   :  { %320 = vrot.lane.b32.xlu0 %v661_v46, %s895_s20 }
 0x235   :  { %v309_v47 = vpop.permute.xlu0 %308 }
 0x236   :  { %v310_v48 = vsel %vm307_vm0, %v309_v47, %v306_v42 }
 0x237   :  { %311 = vrot.lane.b32.xlu1 %v310_v48, %s892_s2  ;;  %s905_s2 = smov 54  }
 0x239   :  { %v341_v54 = vpop.permute.xlu0 %340 }
 0x23b   :  { %330 = vrot.lane.b32.xlu1 %v662_v49, %s896_s22 }
 0x23d   :  { %v361_v62 = vpop.permute.xlu0 %360 }
 0x23f   :  { %350 = vrot.lane.b32.xlu1 %v664_v50, %s897_s8 }
 0x241   :  { %v381_v2 = vpop.permute.xlu0 %380 }
 0x243   :  { %370 = vrot.lane.b32.xlu1 %v666_v51, %s898_s27 }
 0x245   :  { %v321_v6 = vpop.permute.xlu0 %320 }
 0x247   :  { %390 = vrot.lane.b32.xlu1 %v668_v52, %s899_s30 }
 0x2a9   :  { %v312_v53 = vpop.permute.xlu1 %311 }
 0x2aa   :  { %v313_v55 = vsel %vm307_vm0, %v312_v53, %v306_v42 }
 0x2ab   :  { %v343_v56 = vmul.f32 %v341_v54, %v313_v55  ;;  %v363_v1 = vmul.f32 %v361_v62, %v313_v55  ;;  %v383_v5 = vmul.f32 %v381_v2, %v313_v55  ;;  %v323_v8 = vmul.f32 %v321_v6, %v313_v55 }
 0x2ad   :  { %v331_v57 = vpop.permute.xlu1 %330  ;;  %399 = vrot.lane.b32.xlu0 %v343_v56, %s900_s9 }
 0x2ae   :  { %v333_v58 = vmul.f32 %v331_v57, %v313_v55 }
 0x2b0   :  { %395 = vrot.lane.b32.xlu1 %v333_v58, %s901_s0 }
 0x2b1   :  { %v351_v59 = vpop.permute.xlu1 %350  ;;  %407 = vrot.lane.b32.xlu0 %v306_v42, %s895_s20 }
 0x2b2   :  { %v353_v60 = vmul.f32 %v351_v59, %v313_v55 }
 0x2b4   :  { %403 = vrot.lane.b32.xlu1 %v353_v60, %s903_s5 }
 0x2b5   :  { %v371_v63 = vpop.permute.xlu1 %370 }
 0x2b6   :  { %v373_v0 = vmul.f32 %v371_v63, %v313_v55 }
 0x2b8   :  { %415 = vrot.lane.b32.xlu0 %v373_v0, %s904_s10  ;;  %411 = vrot.lane.b32.xlu1 %v363_v1, %s905_s2 }
 0x2b9   :  { %v391_v3 = vpop.permute.xlu1 %390 }
 0x2ba   :  { %v393_v4 = vmul.f32 %v391_v3, %v313_v55 }
 0x2bc   :  { %423 = vrot.lane.b32.xlu0 %v393_v4, %s906_s7  ;;  %419 = vrot.lane.b32.xlu1 %v383_v5, %s907_s11 }
 0x31f   :  { %v400_v7 = vpop.permute.xlu0 %399 }
 0x322   :  { %v396_v9 = vpop.permute.xlu1 %395 }
 0x323   :  { %v426_v10 = vpack.c.bf16 %v396_v9, %v323_v8  ;;  %v408_v11 = vpop.permute.xlu0 %407 }
 0x325   :  { %443 = vrot.lane.b32.xlu1 %v426_v10, %s908_s12 }
 0x326   :  { %v404_v12 = vpop.permute.xlu1 %403 }
 0x327   :  { %v427_v13 = vpack.c.bf16 %v404_v12, %v400_v7 }
 0x329   :  { %445 = vrot.lane.b32.xlu0 %v427_v13, %s908_s12 }
 0x32a   :  { %v412_v15 = vpop.permute.xlu1 %411  ;;  %v416_v16 = vpop.permute.xlu0 %415 }
 0x32b   :  { %v428_v17 = vpack.c.bf16 %v412_v15, %v408_v11 }
 0x32d   :  { %447 = vrot.lane.b32.xlu1 %v428_v17, %s908_s12 }
 0x32e   :  { %v420_v19 = vpop.permute.xlu1 %419  ;;  %v424_v20 = vpop.permute.xlu0 %423 }
 0x32f   :  { %v429_v21 = vpack.c.bf16 %v420_v19, %v416_v16  ;;  %v430_v22 = vpack.c.bf16 %v424_v20, %v424_v20 }
 0x331   :  { %449 = vrot.lane.b32.xlu0 %v429_v21, %s908_s12  ;;  %451 = vrot.lane.b32.xlu1 %v430_v22, %s908_s12 }
 0x335   :  { %435 = vperm.xlu0 %724, %v432_v23  }
 0x397   :  { %v444_v24 = vpop.permute.xlu1 %443 }
 0x398   :  { %686 = vmatpush3.bf16.msra.mxu1 %v444_v24 }
 0x399   :  { %687 = vmatprep.subr.bf16.mxu1 %v902_v61 }
 0x39b   :  { %v446_v25 = vpop.permute.xlu0 %445 }
 0x39c   :  { %688 = vmatpush3.bf16.msra.mxu1 %v446_v25 }
 0x39d   :  { %689 = vmatprep.subr.bf16.mxu1 %v902_v61 }
 0x39f   :  { %v448_v26 = vpop.permute.xlu1 %447 }
 0x3a0   :  { %690 = vmatpush3.bf16.msra.mxu1 %v448_v26 }
 0x3a1   :  { %691 = vmatprep.subr.bf16.mxu1 %v902_v61 }
 0x3a3   :  { %v450_v27 = vpop.permute.xlu0 %449  ;;  %v452_v28 = vpop.permute.xlu1 %451 }
 0x3a4   :  { %692 = vmatpush3.bf16.msra.mxu1 %v450_v27  ;;  %v463_v30 = vsel %vm461_vm2, %v452_v28, 0 }
 0x3a5   :  { %693 = vmatprep.subr.bf16.mxu1 %v902_v61 }
 0x3a8   :  { %694 = vmatpush3.bf16.msra.mxu1 %v463_v30 }
 0x3a9   :  { %558 = vmatprep.subr.bf16.mxu1 %v775_v29 }
 0x3ab   :  { %696 = vmatmul.mubr.msk.bf16.vlgmr.msra.gmra.mrb[0].mxu1 %vm457_vm3, %v431_v31 }
 0x3ac   :  { %559 = vmatpush1.bf16.msra.mxu1 %v773_v32  ;;  %590 = vmatprep.mubr.bf16.mxu1 %v910_v18 }
 0x3ad   :  { %560 = vmatprep.subr.bf16.mxu1 %v778_v33 }
 0x3b0   :  { %561 = vmatpush1.bf16.msra.mxu1 %v776_v35 }
 0x3b1   :  { %562 = vmatprep.subr.bf16.mxu1 %v781_v36 }
 0x3b4   :  { %563 = vmatpush1.bf16.msra.mxu1 %v779_v37  ;;  %v436_v40 = vpop.permute.xlu0 %435 }
 0x3b5   :  { %564 = vmatprep.subr.bf16.mxu1 %v784_v38 }
 0x3b8   :  { %565 = vmatpush1.bf16.msra.mxu1 %v782_v39 }
 0x47e   :  { %v499_v41 = vpop.f32.mrb[0].mxu1 }
 0x47f   :  { %v500_v42 = vadd.f32 %v499_v41, %v436_v40  ;;  %v697_v43 = vpop.f32.mrb[1].mxu1 }
 0x480   :  { %v502_v44 = vpop.f32.mrb[2].mxu1 }
 0x481   :  { %v505_v45 = vpack.c.bf16 %v500_v42, %v500_v42  ;;  %v698_v46 = vpop.f32.mrb[3].mxu1 }
 0x483   :  { %678 = vmatmul.mubr.msk.bf16.vlgmr.msra.gmra.mrb[4].mxu1 %vm554_vm4, %v505_v45 }
 0x556   :  { %v592_v47 = vpop.f32.mrb[4].mxu1 }
 0x557   :  { %v599_v48 = vsub.f32 0.0, %v592_v47  ;;  %v594_v49 = vpop.f32.mrb[5].mxu1 }
 0x558   :  { %v600_v50 = vsub.f32 0.0, %v594_v49  ;;  %v596_v51 = vpop.f32.mrb[6].mxu1 }
 0x559   :  { %v601_v52 = vmul.f32 1.442695, %v599_v48  ;;  %v597_v53 = vpop.f32.mrb[7].mxu1 }
 0x55a   :  { %v603_v54 = vmul.f32 1.442695, %v600_v50 }
 0x55b   :  { %785 = vpow2.f32 %v601_v52 }
 0x55c   :  { %787 = vpow2.f32 %v603_v54 }
 0x565   :  { %v786_v55 = vpop.eup %785 }
 0x566   :  { %v788_v56 = vpop.eup %787  ;;  %v605_v57 = vadd.f32 1.0, %v786_v55 }
 0x567   :  { %v606_v58 = vadd.f32 1.0, %v788_v56 }
 0x568   :  { %789 = vrcp.f32 %v605_v57 }
 0x569   :  { %791 = vrcp.f32 %v606_v58 }
 0x572   :  { %v790_v59 = vpop.eup %789 }
 0x573   :  { %v792_v60 = vpop.eup %791  ;;  %v609_v61 = vmul.f32 %v790_v59, %v993_v34 }
 0x574   :  { %v610_v62 = vmul.f32 %v792_v60, %v989_v14 }
 0x575   :  { %611 = vst [vmem:[#allocation8] sm:$0xff] %v609_v61 }
 0x576   :  { %612 = vst [vmem:[#allocation8 + $0x8] sm:$0xff] %v610_v62 }
 0x577   :  { %870 = shalt.err (!%p867_p0)
}
 0x578   :  { %s871_s20 = scalar_lea.hbm %s1050_s6, 256 }
 0x579   :  { %p872_p1 = scmp.ne.s32.totalorder %s1050_s6, %s871_s20  ;;  %p875_p2 = scmp.lt.u32.totalorder %s871_s20, %s1050_s6 }
 0x57b   :  { %p877_p3 = pnand %p875_p2, %p872_p1 }
 0x57d   :  { %880 = shalt.err (!%p877_p3)
}
 0x57e   :  { %622 = dma.vmem_to_hbm [thread:$0]  %s620_s16, 256, %s1050_s6, [#allocation4]  }
 0x57f   :  { %885 = dma.done.wait [#allocation4], 256  }
 0x580   :  { %886 = vsyncadd [#allocation4], 4294967040 }
 0x581   :  { %626 = vsyncpa [#allocation3], 1 }
 0x582   :  { %627 = vsyncpa [#allocation6], 1 }
 0x583   :  { %628 = vsyncpa [#allocation4], 1 }

</bundles_post_ra>
